<compile_context>
chip_gen: v7x
topology: tpu7x:2x2x1
jax: 0.10.0
libtpu: 0.0.40
codegen_flags: <defaults>
</compile_context>

<pallas_src>
import math

import jax
import jax.numpy as jnp
from jax.experimental import pallas as pl
from jax.experimental.pallas import tpu as pltpu


def _round_up(x, m):
    return ((x + m - 1) // m) * m


def _make_bce_sum_kernel(tile_rows, lane, n_valid, n_tiles, has_pad):
    """Builds the per-head BCE partial-sum kernel for a fixed tiling."""
    eps = 1e-7  # Python float -> folded as an immediate (no captured constant)

    def kernel(prob_ref, tgt_ref, acc_ref):
        t_idx = pl.program_id(1)          # pixel-tile (reduction) axis

        @pl.when(t_idx == 0)
        def _():
            acc_ref[...] = jnp.zeros_like(acc_ref)

        p = jnp.clip(prob_ref[...], eps, 1.0 - eps)        # (tile_rows, lane)
        t = tgt_ref[...]                                    # (tile_rows, lane)
        # Binary targets: one EUP log per pixel instead of two.
        bce = -jnp.log(jnp.where(t > 0.5, p, 1.0 - p))

        if has_pad:
            last = n_tiles - 1

            @pl.when(t_idx == last)
            def _():
                # Mask padded tail pixels exactly (padding never spans more
                # than the last tile by construction).
                row = jax.lax.broadcasted_iota(jnp.int32, bce.shape, 0)
                col = jax.lax.broadcasted_iota(jnp.int32, bce.shape, 1)
                gidx = (t_idx * tile_rows + row) * lane + col
                acc_ref[...] += jnp.where(gidx < n_valid, bce, 0.0)

            @pl.when(t_idx != last)
            def _():
                acc_ref[...] += bce
        else:
            acc_ref[...] += bce

    return kernel


def multi_seg_head_loss(probs, target, weights, head_names, *,
                        lane=512, tile_rows=None):
    """probs: (NH, B, H, W) f32 prob maps in (0,1); target: (B, H, W);
    weights: (NH,).  Returns the dict the PyTorch module returns."""
    NH = probs.shape[0]
    P = int(math.prod(probs.shape[1:]))
    assert int(math.prod(target.shape)) == P
    assert lane % 128 == 0

    # ---- lane-dense flattened layout (pure layout plumbing) ----------------
    probs_flat = probs.reshape(NH, P).astype(jnp.float32)
    tgt_flat = target.reshape(P).astype(jnp.float32)

    rows_total = pl.cdiv(P, lane)
    if tile_rows is None:
        tile_rows = (1 << 20) // (4 * lane)          # ~1 MiB f32 tiles
    tile_rows = max(8, (tile_rows // 8) * 8)         # multiple of 8 (sublanes)
    tile_rows = min(tile_rows, _round_up(rows_total, 8))
    rows_pad = _round_up(rows_total, tile_rows)
    n_tiles = rows_pad // tile_rows
    pad = rows_pad * lane - P

    if pad:
        probs_flat = jnp.pad(probs_flat, ((0, 0), (0, pad)))
        tgt_flat = jnp.pad(tgt_flat, ((0, pad),))

    probs3 = probs_flat.reshape(NH, rows_pad, lane)
    tgt2 = tgt_flat.reshape(rows_pad, lane)

    kernel = _make_bce_sum_kernel(tile_rows, lane, P, n_tiles, pad > 0)

    acc = pl.pallas_call(
        kernel,
        out_shape=jax.ShapeDtypeStruct((NH, tile_rows, lane), jnp.float32),
        grid_spec=pltpu.PrefetchScalarGridSpec(
            num_scalar_prefetch=0,
            grid=(NH, n_tiles),                      # head (parallel), tile (reduce)
            in_specs=[
                # per-head prob-map pixel tile (head dim squeezed away)
                pl.BlockSpec((None, tile_rows, lane),
                             lambda h, t: (h, t, 0)),
                # shared target pixel tile (re-read per head; NH is small)
                pl.BlockSpec((tile_rows, lane),
                             lambda h, t: (t, 0)),
            ],
            # per-head elementwise accumulator, resident across the tile axis
            out_specs=pl.BlockSpec((None, tile_rows, lane),
                                   lambda h, t: (h, 0, 0)),
        ),
        compiler_params=pltpu.CompilerParams(
            dimension_semantics=("parallel", "arbitrary"),
            vmem_limit_bytes=32 * 1024 * 1024),
    )(probs3, tgt2)

    # Final tiny reductions + weighting in the wrapper (keeps head axis parallel).
    per_head = acc.reshape(NH, -1).sum(axis=-1) / jnp.float32(P)
    total = jnp.dot(weights.astype(jnp.float32), per_head)

    out = {f"{name}_total_loss": per_head[i]
           for i, name in enumerate(head_names)}
    out["total_loss"] = total
    return out


def _reference(probs, target, weights):
    eps = 1e-7
    p = jnp.clip(probs.astype(jnp.float32), eps, 1.0 - eps)
    t = target[None].astype(jnp.float32)
    bce = -(t * jnp.log(p) + (1.0 - t) * jnp.log(1.0 - p))
    per_head = bce.reshape(probs.shape[0], -1).mean(axis=1)
    return per_head, jnp.sum(weights * per_head)


if __name__ == "__main__":
    key = jax.random.PRNGKey(0)
    k1, k2 = jax.random.split(key)

    NH, B, H, W = 3, 2, 30, 32                      # 3 seg heads, small maps
    head_names = ["road", "lane", "curb"]

    # deterministic synthetic "model outputs": sigmoid of random logits
    logits = jax.random.normal(k1, (NH, B, H, W), dtype=jnp.float32)
    probs = jax.nn.sigmoid(logits)
    # binary ground-truth mask shared across heads
    target = (jax.random.uniform(k2, (B, H, W)) > 0.5).astype(jnp.float32)
    # cfg.weight — deterministic per-head weights
    weights = jnp.array([1.0, 0.5, 0.25], dtype=jnp.float32)

    ref_ph, ref_total = _reference(probs, target, weights)

    # Config 1: small tiles -> exercises multi-tile accumulation + tail masking.
    out = multi_seg_head_loss(probs, target, weights, head_names,
                              lane=128, tile_rows=8)
    jax.block_until_ready(out["total_loss"])
    for i, name in enumerate(head_names):
        assert jnp.allclose(out[f"{name}_total_loss"], ref_ph[i],
                            rtol=1e-5, atol=1e-5)
    assert jnp.allclose(out["total_loss"], ref_total, rtol=1e-5, atol=1e-5)

    # Config 2: default (production) tiling -> degenerate single-tile path.
    out2 = multi_seg_head_loss(probs, target, weights, head_names)
    jax.block_until_ready(out2["total_loss"])
    for i, name in enumerate(head_names):
        assert jnp.allclose(out2[f"{name}_total_loss"], ref_ph[i],
                            rtol=1e-5, atol=1e-5)
    assert jnp.allclose(out2["total_loss"], ref_total, rtol=1e-5, atol=1e-5)

    print("KERNEL_OK")
</pallas_src>

<mosaic_0001>
module attributes {stable_mosaic.version = 11 : i64} {
  func.func @kernel(%arg0: i32, %arg1: i32, %arg2: memref<1x8x128xf32, #tpu.memory_space<vmem>>, %arg3: memref<8x128xf32, #tpu.memory_space<vmem>>, %arg4: memref<1x8x128xf32, #tpu.memory_space<vmem>>) attributes {dimension_semantics = [#tpu.dimension_semantics<parallel>, #tpu.dimension_semantics<arbitrary>], iteration_bounds = array<i64: 3, 2>, scalar_prefetch = 0 : i64, scratch_operands = 0 : i64, tpu.core_type = #tpu.core_type<tc>, window_params = [{transform_indices = @transform_0, window_bounds = array<i64: 1, 8, 128>}, {transform_indices = @transform_1, window_bounds = array<i64: 8, 128>}, {transform_indices = @transform_2, window_bounds = array<i64: 1, 8, 128>}]} {
    %c0_i32 = arith.constant 0 : i32
    %0 = arith.cmpi eq, %arg1, %c0_i32 : i32
    %1 = arith.extui %0 : i1 to i32
    %c0_i32_0 = arith.constant 0 : i32
    %2 = arith.cmpi ne, %1, %c0_i32_0 : i32
    scf.if %2 {
      %cst_12 = arith.constant 0.000000e+00 : f32
      %24 = vector.broadcast %cst_12 : f32 to vector<8x128xf32>
      %c0_13 = arith.constant 0 : index
      %c0_14 = arith.constant 0 : index
      %c0_15 = arith.constant 0 : index
      %25 = vector.load %arg4[%c0_13, %c0_14, %c0_15] : memref<1x8x128xf32, #tpu.memory_space<vmem>>, vector<1x8x128xf32>
      %26 = vector.shape_cast %25 : vector<1x8x128xf32> to vector<8x128xf32>
      %27 = vector.shape_cast %24 : vector<8x128xf32> to vector<1x8x128xf32>
      tpu.vector_store %arg4[%c0_13, %c0_14, %c0_15], %27 {strides = array<i32>} : memref<1x8x128xf32, #tpu.memory_space<vmem>>, vector<1x8x128xf32>,
    } else {
    }
    %c0 = arith.constant 0 : index
    %c0_1 = arith.constant 0 : index
    %c0_2 = arith.constant 0 : index
    %3 = vector.load %arg2[%c0, %c0_1, %c0_2] : memref<1x8x128xf32, #tpu.memory_space<vmem>>, vector<1x8x128xf32>
    %4 = vector.shape_cast %3 : vector<1x8x128xf32> to vector<8x128xf32>
    %cst = arith.constant 1.000000e-07 : f32
    %cst_3 = arith.constant 0.99999988 : f32
    %5 = vector.broadcast %cst : f32 to vector<8x128xf32>
    %6 = arith.maximumf %5, %4 : vector<8x128xf32>
    %7 = vector.broadcast %cst_3 : f32 to vector<8x128xf32>
    %8 = arith.minimumf %7, %6 : vector<8x128xf32>
    %c0_4 = arith.constant 0 : index
    %c0_5 = arith.constant 0 : index
    %9 = vector.load %arg3[%c0_4, %c0_5] : memref<8x128xf32, #tpu.memory_space<vmem>>, vector<8x128xf32>
    %cst_6 = arith.constant 5.000000e-01 : f32
    %10 = vector.broadcast %cst_6 : f32 to vector<8x128xf32>
    %11 = arith.cmpf ogt, %9, %10 : vector<8x128xf32>
    %cst_7 = arith.constant 1.000000e+00 : f32
    %12 = vector.broadcast %cst_7 : f32 to vector<8x128xf32>
    %13 = arith.subf %12, %8 : vector<8x128xf32>
    %14 = arith.select %11, %8, %13 : vector<8x128xi1>, vector<8x128xf32>
    %15 = math.log %14 : vector<8x128xf32>
    %cst_8 = arith.constant 0.000000e+00 : f32
    %16 = vector.broadcast %cst_8 : f32 to vector<8x128xf32>
    %17 = arith.subf %16, %15 : vector<8x128xf32>
    %c1_i32 = arith.constant 1 : i32
    %18 = arith.cmpi eq, %arg1, %c1_i32 : i32
    %19 = arith.extui %18 : i1 to i32
    %c0_i32_9 = arith.constant 0 : i32
    %20 = arith.cmpi ne, %19, %c0_i32_9 : i32
    scf.if %20 {
      %24 = tpu.iota {dimensions = array<i32: 0>} : vector<8x128xi32>
      %25 = tpu.iota {dimensions = array<i32: 1>} : vector<8x128xi32>
      %c8_i32 = arith.constant 8 : i32
      %26 = arith.muli %arg1, %c8_i32 : i32
      %27 = vector.broadcast %26 : i32 to vector<8x128xi32>
      %28 = arith.addi %27, %24 : vector<8x128xi32>
      %c128_i32 = arith.constant 128 : i32
      %29 = vector.broadcast %c128_i32 : i32 to vector<8x128xi32>
      %30 = arith.muli %28, %29 : vector<8x128xi32>
      %31 = arith.addi %30, %25 : vector<8x128xi32>
      %c0_12 = arith.constant 0 : index
      %c0_13 = arith.constant 0 : index
      %c0_14 = arith.constant 0 : index
      %32 = vector.load %arg4[%c0_12, %c0_13, %c0_14] : memref<1x8x128xf32, #tpu.memory_space<vmem>>, vector<1x8x128xf32>
      %33 = vector.shape_cast %32 : vector<1x8x128xf32> to vector<8x128xf32>
      %c1920_i32 = arith.constant 1920 : i32
      %34 = vector.broadcast %c1920_i32 : i32 to vector<8x128xi32>
      %35 = arith.cmpi slt, %31, %34 : vector<8x128xi32>
      %cst_15 = arith.constant 0.000000e+00 : f32
      %36 = vector.broadcast %cst_15 : f32 to vector<8x128xf32>
      %37 = arith.select %35, %17, %36 : vector<8x128xi1>, vector<8x128xf32>
      %38 = arith.addf %33, %37 : vector<8x128xf32>
      %c0_16 = arith.constant 0 : index
      %c0_17 = arith.constant 0 : index
      %c0_18 = arith.constant 0 : index
      %39 = vector.load %arg4[%c0_16, %c0_17, %c0_18] : memref<1x8x128xf32, #tpu.memory_space<vmem>>, vector<1x8x128xf32>
      %40 = vector.shape_cast %39 : vector<1x8x128xf32> to vector<8x128xf32>
      %41 = vector.shape_cast %38 : vector<8x128xf32> to vector<1x8x128xf32>
      tpu.vector_store %arg4[%c0_16, %c0_17, %c0_18], %41 {strides = array<i32>} : memref<1x8x128xf32, #tpu.memory_space<vmem>>, vector<1x8x128xf32>,
    } else {
    }
    %c1_i32_10 = arith.constant 1 : i32
    %21 = arith.cmpi ne, %arg1, %c1_i32_10 : i32
    %22 = arith.extui %21 : i1 to i32
    %c0_i32_11 = arith.constant 0 : i32
    %23 = arith.cmpi ne, %22, %c0_i32_11 : i32
    scf.if %23 {
      %c0_12 = arith.constant 0 : index
      %c0_13 = arith.constant 0 : index
      %c0_14 = arith.constant 0 : index
      %24 = vector.load %arg4[%c0_12, %c0_13, %c0_14] : memref<1x8x128xf32, #tpu.memory_space<vmem>>, vector<1x8x128xf32>
      %25 = vector.shape_cast %24 : vector<1x8x128xf32> to vector<8x128xf32>
      %26 = arith.addf %25, %17 : vector<8x128xf32>
      %c0_15 = arith.constant 0 : index
      %c0_16 = arith.constant 0 : index
      %c0_17 = arith.constant 0 : index
      %27 = vector.load %arg4[%c0_15, %c0_16, %c0_17] : memref<1x8x128xf32, #tpu.memory_space<vmem>>, vector<1x8x128xf32>
      %28 = vector.shape_cast %27 : vector<1x8x128xf32> to vector<8x128xf32>
      %29 = vector.shape_cast %26 : vector<8x128xf32> to vector<1x8x128xf32>
      tpu.vector_store %arg4[%c0_15, %c0_16, %c0_17], %29 {strides = array<i32>} : memref<1x8x128xf32, #tpu.memory_space<vmem>>, vector<1x8x128xf32>,
    } else {
    }
    return
  }
  func.func @transform_0(%arg0: i32, %arg1: i32) -> (i32, i32, i32) {
    %c0_i32 = arith.constant 0 : i32
    %c0_i32_0 = arith.constant 0 : i32
    return %arg0, %arg1, %c0_i32 : i32, i32, i32
  }
  func.func @transform_1(%arg0: i32, %arg1: i32) -> (i32, i32) {
    %c0_i32 = arith.constant 0 : i32
    %c0_i32_0 = arith.constant 0 : i32
    return %arg1, %c0_i32 : i32, i32
  }
  func.func @transform_2(%arg0: i32, %arg1: i32) -> (i32, i32, i32) {
    %c0_i32 = arith.constant 0 : i32
    %c0_i32_0 = arith.constant 0 : i32
    %c0_i32_1 = arith.constant 0 : i32
    return %arg0, %c0_i32, %c0_i32_0 : i32, i32, i32
  }
}

</mosaic_0001>

<bundles_post_ra>
// kernel: tpu_custom_call.1
= control target key start
LH: loop header
LB: loop body
LE: loop exit
PB: predicated region body
PF: predicated region fallthrough
CT: control target
= control target key end

     0   :  { %s1099_s0 = inlined_call_operand.hbm [shape: f32[3,16,128], index: 0, kind: input, shape index: {}]   ;;  %s1100_s1 = inlined_call_operand.hbm [shape: f32[16,128], index: 1, kind: input, shape index: {}]   ;;  %s1101_s2 = inlined_call_operand.hbm [shape: f32[3,8,128], index: 2, kind: output, shape index: {}]  }
   0x1   :  { %1111 = sst [smem:[#allocation16_spill]] %s1101_s2 }
   0x2   :  { %7 = vsyncpa [#allocation3], 0 }
   0x3   :  { %9 = vsyncpa [#allocation3 + $0x1], 0 }
   0x4   :  { %10 = vsyncpa [#allocation6], 0 }
   0x5   :  { %12 = vsyncpa [#allocation6 + $0x1], 0 }
   0x6   :  { %13 = vsyncpa [#allocation4], 0 }
   0x7   :  { %15 = vsyncpa [#allocation4 + $0x1], 0  ;;  %s758_s9 = smov 0   ;;  %s760_s10 = smov 0  }
   0x8   :  { %s762_s11 = smov 0   ;;  %s764_s12 = smov 0  }
   0x9   :  { %s766_s13 = smov 0   ;;  %s768_s14 = smov 0  }
   0xa   :  { %s770_s15 = smov 0   ;;  %s772_s16 = smov 0  }
   0xb   :  { %s774_s17 = smov 0   ;;  %s776_s18 = smov 0  }
   0xc   :  { %s778_s19 = smov 0   ;;  %s780_s20 = smov 0  }
   0xd   :  { %s782_s21 = smov 0   ;;  %s784_s22 = smov 0  }
   0xe LB: > { %1112 = sst [smem:[#allocation11_spill]] %s693_s11  ;;  %s372_s23 = sadd.s32 4294967295, %s737_s22   ;;  %s737_s22 = sphi %s784_s22, %s21_s22   ;;  %s733_s21 = sphi %s782_s21, %s1153_s21   ;;  %s729_s20 = sphi %s780_s20, %s1152_s20   ;;  %s725_s19 = sphi %s778_s19, %s1151_s19   ;;  %s721_s18 = sphi %s776_s18, %s1150_s18   ;;  %s717_s17 = sphi %s774_s17, %s1149_s17   ;;  %s713_s16 = sphi %s772_s16, %s1148_s16   ;;  %s709_s15 = sphi %s770_s15, %s1147_s15   ;;  %s705_s14 = sphi %s768_s14, %s1146_s14   ;;  %s701_s13 = sphi %s766_s13, %s1145_s13   ;;  %s697_s12 = sphi %s764_s12, %s1144_s12   ;;  %s693_s11 = sphi %s762_s11, %s1138_s11   ;;  %s689_s10 = sphi %s760_s10, %s1143_s10   ;;  %s685_s9 = sphi %s758_s9, %s1142_s9  }
   0xf   : > { %s373_s24 = sadd.s32 4294967294, %s737_s22   ;;  %s30_s25 = sadd.s32 1, %s729_s20 }
  0x10   : > { %s33_s26 = sadd.s32 1, %s733_s21  ;;  %p31_p0 = scmp.ge.s32.totalorder %s30_s25, 2 }
  0x11   : > { %s42_s27 = sadd.s32 1, %s717_s17  ;;  %p49_p1 = scmp.ne.s32.totalorder %s717_s17, %s713_s16 }
  0x12   : > { %p1106_p2 = scmp.eq.s32.totalorder %s737_s22, 0  ;;  %s1155_s25 = smov (%p31_p0, %s30_s25), 0 }
  0x13   : > { %1113 = sst [smem:[#allocation12_spill]] %s1155_s25  ;;  %s1157_s26 = smov (!%p31_p0, %s33_s26), %s733_s21 }
  0x14   : > { %s839_s28 = ssub.s32 %s729_s20, %s1155_s25  ;;  %p843_p3 = por %p1106_p2, %p49_p1 }
  0x15   : > { %p35_p4 = scmp.ge.s32.totalorder %s1157_s26, 3  ;;  %p55_p5 = scmp.ne.s32.totalorder %s713_s16, %s709_s15 }
  0x16   : > { %p848_p6 = scmp.eq.s32.totalorder %s372_s23, 0  ;;  %s94_s4 = sadd.s32 1, %s693_s11 }
  0x17   : > { %s1159_s26 = smov (%p35_p4, %s1157_s26), 0  ;;  %p104_p9 = scmp.ne.s32.totalorder %s693_s11, %s689_s10 }
  0x18   : > { %1116 = sst [smem:[#allocation13_spill]] %s1159_s26  ;;  %p857_p8 = por %p848_p6, %p55_p5 }
  0x19   : > { %s37_s5 = ssub.s32 %s733_s21, %s1159_s26  ;;  %p105_p12 = scmp.eq.s32.totalorder %s372_s23, 5 }
  0x1a   : > { %s1117_s3 = scalar_select %p857_p8, 1, 0 }
  0x1b   : > { %s39_s6 = sor.u32 %s839_s28, %s37_s5  ;;  %p92_p10 = scmp.eq.s32.totalorder %s37_s5, 0 }
  0x1c   : > { %p40_p11 = scmp.eq.s32.totalorder %s39_s6, 0  ;;  %p873_p13 = por %p105_p12, %p104_p9 }
  0x1d   : > { %s868_s7 = scalar_select %p92_p10, %s693_s11, %s94_s4  }
  0x1e   : > { %s871_s8 = scalar_select %p40_p11, %s717_s17, %s42_s27  }
  0x1f   : > { %1118 = sst [smem:[#allocation14_spill]] %s868_s7  ;;  %p110_p0 = scmp.ne.s32.totalorder %s689_s10, %s685_s9 }
  0x20   : > { %1119 = sst [smem:[#allocation15_spill]] %s871_s8  ;;  %p111_p1 = scmp.eq.s32.totalorder %s373_s24, 5 }
  0x21   : > { %s1120_s15 = scalar_select %p873_p13, 1, 0 }
  0x22   : > { %p1107_p4 = scmp.lt.s32.totalorder %s737_s22, 6  ;;  %s131_s26 = sand.u32 1, %s717_s17  }
  0x23   : > { %p881_p5 = por %p111_p1, %p110_p0  ;;  %s376_s23 = sshll.u32 %s131_s26, 3 }
  0x24   : > { %s377_s4 = sshll.u32 %s733_s21, 1  ;;  %s135_s27 = scalar_lea.vmem [#allocation2], %s376_s23 }
  0x25   : > { %s1121_s5 = scalar_select %p881_p5, 1, 0 }
  0x26   : > { %s140_s6 = sadd.s32 %s729_s20, %s377_s4  ;;  %s144_s8 = sshll.u32 %s135_s27, 4  ;;  %s892_s8 = int_to_ptr.vmem [resolvable:$true] %s144_s8 }
  0x27   : > { %s378_s25 = sshll.u32 %s140_s6, 7  ;;  %p898_p9 = pnand %p1107_p4, %p843_p3 }
  0x28   : > { %s890_s2 = scalar_lea.hbm %s1099_s0, %s378_s25  ;;  %s132_s23 = scalar_lea.sflag [#allocation3], %s131_s26 }
  0x29   : > { %s527_s11 = scalar_lea.hbm %s890_s2, 128  ;;  %p529_p0 = pneg %p898_p9 }
  0x2a   : > { %p528_p12 = scmp.ne.s32.totalorder %s890_s2, %s527_s11  ;;  %s532_s7 = scalar_lea.hbm %s1099_s0, 768 }
  0x2b   : > { %p533_p3 = scmp.lt.u32.totalorder %s890_s2, %s1099_s0  ;;  %p534_p4 = scmp.lt.u32.totalorder %s532_s7, %s527_s11 }
  0x2c   : > { %p530_p1 = pnand %p529_p0, %p528_p12  ;;  %p536_p10 = scmp.lt.u32.totalorder %s527_s11, %s890_s2 }
  0x2d   : > { %p535_p7 = por %p534_p4, %p533_p3 }
  0x2e   : > { %p531_p2 = pneg %p530_p1 }
  0x2f   : > { %p537_p11 = por %p536_p10, %p535_p7 }
  0x31   : > { %p538_p5 = pnand %p537_p11, %p531_p2 }
  0x33   : > { %541 = shalt.err (!%p538_p5)
}
  0x34   : > { %s542_s26 = scalar_lea.vmem %s892_s8, 128  ;;  %s739_s27 = smov [#allocation2]  }
  0x35   : > { %p543_p12 = scmp.ne.s32.totalorder %s892_s8, %s542_s26  ;;  %s547_s25 = sshll.u32 %s739_s27, 4  ;;  %s548_s25 = int_to_ptr.vmem [resolvable:$false] %s547_s25 }
  0x36   : > { %s549_s29 = scalar_lea.vmem %s548_s25, 256  ;;  %p550_p8 = scmp.lt.s32.totalorder %s892_s8, %s548_s25 }
  0x37   : > { %p545_p1 = pnand %p543_p12, %p529_p0  ;;  %p551_p4 = scmp.lt.s32.totalorder %s549_s29, %s542_s26 }
  0x39   : > { %p546_p13 = pneg %p545_p1  ;;  %p552_p3 = por %p551_p4, %p550_p8 }
  0x3b   : > { %p553_p7 = pnand %p552_p3, %p546_p13 }
  0x3d   : > { %556 = shalt.err (!%p553_p7)
}
  0x3e   : > { %402 = dma.hbm_to_vmem [thread:$0]  (!%p898_p9), %s890_s2, 128, %s892_s8, %s132_s23  }
  0x3f   : > { %p1123_p2 = scmp.lt.s32.totalorder %s737_s22, 7  ;;  %p1124_p8 = scmp.ge.s32.totalorder %s737_s22, 1 }
  0x40   : > { %s68_s11 = sadd.s32 1, %s705_s14  ;;  %p1126_p5 = scmp.eq.s32.totalorder %s839_s28, 0 }
  0x41   : > { %p933_p13 = pnand %p1124_p8, %p1123_p2  ;;  %p75_p10 = scmp.ne.s32.totalorder %s705_s14, %s701_s13 }
  0x42   : > { %s941_s7 = scalar_select %p1126_p5, %s705_s14, %s68_s11  }
  0x43   : > { %p81_p11 = scmp.ne.s32.totalorder %s701_s13, %s697_s12  ;;  %s151_s4 = sand.u32 1, %s705_s14  }
  0x44   : > { %s380_s6 = sshll.u32 %s729_s20, 7  ;;  %p1127_p0 = scmp.eq.s32.totalorder %s737_s22, 0 }
  0x45   : > { %p953_p1 = por %p81_p11, %p848_p6  ;;  %s379_s2 = sshll.u32 %s151_s4, 3 }
  0x46   : > { %p77_p12 = por %p75_p10, %p1127_p0  ;;  %s960_s27 = scalar_lea.hbm %s1100_s1, %s380_s6 }
  0x47   : > { %s1128_s26 = scalar_select %p953_p1, 1, 0 }
  0x48   : > { %s155_s12 = scalar_lea.vmem [#allocation5], %s379_s2  ;;  %p1129_p9 = scmp.lt.s32.totalorder %s737_s22, 6 }
  0x49   : > { %s162_s28 = sshll.u32 %s155_s12, 4  ;;  %s152_s30 = scalar_lea.sflag [#allocation6], %s151_s4  ;;  %s968_s28 = int_to_ptr.vmem [resolvable:$true] %s162_s28 }
  0x4a   : > { %p964_p4 = pnand %p1129_p9, %p77_p12  ;;  %s557_s29 = scalar_lea.hbm %s960_s27, 128 }
  0x4b   : > { %p558_p6 = scmp.ne.s32.totalorder %s960_s27, %s557_s29  ;;  %s562_s2 = scalar_lea.hbm %s1100_s1, 256 }
  0x4c   : > { %p559_p3 = pneg %p964_p4  ;;  %p563_p8 = scmp.lt.u32.totalorder %s960_s27, %s1100_s1 }
  0x4d   : > { %p564_p5 = scmp.lt.u32.totalorder %s562_s2, %s557_s29  ;;  %p566_p11 = scmp.lt.u32.totalorder %s557_s29, %s960_s27 }
  0x4e   : > { %p560_p7 = pnand %p559_p3, %p558_p6 }
  0x4f   : > { %p565_p10 = por %p564_p5, %p563_p8 }
  0x50   : > { %p561_p2 = pneg %p560_p7 }
  0x51   : > { %p567_p0 = por %p566_p11, %p565_p10 }
  0x53   : > { %p568_p12 = pnand %p567_p0, %p561_p2 }
  0x55   : > { %571 = shalt.err (!%p568_p12)
}
  0x56   : > { %s572_s4 = scalar_lea.vmem %s968_s28, 128  ;;  %s740_s12 = smov [#allocation5]  }
  0x57   : > { %p573_p9 = scmp.ne.s32.totalorder %s968_s28, %s572_s4  ;;  %s577_s11 = sshll.u32 %s740_s12, 4  ;;  %s578_s11 = int_to_ptr.vmem [resolvable:$false] %s577_s11 }
  0x58   : > { %s579_s6 = scalar_lea.vmem %s578_s11, 256  ;;  %p580_p1 = scmp.lt.s32.totalorder %s968_s28, %s578_s11 }
  0x59   : > { %p575_p6 = pnand %p573_p9, %p559_p3  ;;  %p581_p8 = scmp.lt.s32.totalorder %s579_s6, %s572_s4 }
  0x5b   : > { %p576_p7 = pneg %p575_p6  ;;  %p582_p5 = por %p581_p8, %p580_p1 }
  0x5d   : > { %p583_p10 = pnand %p582_p5, %p576_p7 }
  0x5f   : > { %586 = shalt.err (!%p583_p10)
}
  0x60   : > { %405 = dma.hbm_to_vmem [thread:$0]  (!%p964_p4), %s960_s27, 128, %s968_s28, %s152_s30  }
  0x61   : > { %171 = sbr.rel (%p933_p13) target bundleno = 181 (0xb5), region = 28  ;;  %s173_s29 = sand.u32 (!%p933_p13), 1, %s713_s16  }
  0x62   : > { %s382_s2 = sshll.u32 (!%p933_p13), %s173_s29, 3  ;;  %s174_s8 = scalar_lea.sflag (!%p933_p13), [#allocation3], %s173_s29 }
  0x63   : > { %s177_s23 = scalar_lea.vmem (!%p933_p13), [#allocation2], %s382_s2  ;;  %p1131_p3 = scmp.ne.s32.totalorder (!%p933_p13), %s1117_s3, 0 }
  0x68   : > { %672 = dma.done.wait (%p1131_p3), %s174_s8, 128  }
  0x69   : > { %674 = vsyncadd (%p1131_p3), %s174_s8, 4294967168  ;;  %s182_s25 = sand.u32 1, %s701_s13   ;;  %p1132_p1 = scmp.ne.s32.totalorder %s1128_s26, 0 }
  0x6a   : > { %s383_s4 = sshll.u32 %s182_s25, 3  ;;  %s183_s12 = scalar_lea.sflag [#allocation6], %s182_s25 }
  0x6b   : > { %s186_s27 = scalar_lea.vmem [#allocation5], %s383_s4 }
  0x6c   : > { %676 = dma.done.wait (%p1132_p1), %s183_s12, 128  }
  0x6d   : > { %678 = vsyncadd (%p1132_p1), %s183_s12, 4294967168  ;;  %s209_s24 = sand.u32 1, %s689_s10   ;;  %p385_p13 = scmp.ne.s32.totalorder %s721_s18, 0 }
  0x6e   : > { %s384_s28 = sshll.u32 %s209_s24, 3  ;;  %v741_v0 = vmov (!%p385_p13), 0.0  }
  0x6f   : > { %s1010_s30 = scalar_lea.vmem [#allocation7], %s384_s28  ;;  %215 = sbr.rel (%p385_p13) target bundleno = 118 (0x76), region = 40 }
  0x70   : > { %216 = vst [vmem:[%s1010_s30] sm:$0xff] (!%p385_p13), %v741_v0 }
  0x76 PF: > { %v217_v1 = vld [vmem:[%s177_s23] sm:$0xff]  ;;  %v220_v3 = vld [vmem:[%s186_s27] sm:$0xff]  ;;  %p386_p4 = scmp.ne.s32.totalorder %s721_s18, 1 }
  0x77   : > { %v218_v2 = vmax.f32 %v217_v1, 1e-07  ;;  %vm221_vm0 = vcmp.gt.f32.partialorder %v220_v3, 0.5  ;;  %v231_v10 = vlaneseq (!%p386_p4)  ;;  %s387_s3 = sshll.u32 (!%p386_p4), %s721_s18, 3  ;;  %v240_v17 = vld [vmem:[%s1010_s30] sm:$0xff] (!%p386_p4) }
  0x78   : > { %v236_v11 = vstv (!%p386_p4), %s387_s3 }
  0x79   : > { %v219_v4 = vmin.f32 %v218_v2, 0.9999999  ;;  %v232_v12 = vshrl.u32 (!%p386_p4), %v231_v10, 7  ;;  %v234_v13 = vand.u32 (!%p386_p4), 127, %v231_v10 }
  0x7b   : > { %v222_v5 = vsub.f32 1.0, %v219_v4  ;;  %v237_v14 = vadd.s32 (!%p386_p4), %v236_v11, %v232_v12 }
  0x7d   : > { %v223_v6 = vsel %vm221_vm0, %v219_v4, %v222_v5  ;;  %v238_v15 = vmul.u32 (!%p386_p4), 128, %v237_v14 }
  0x7e   : > { %525 = vlog2.f32 %v223_v6 }
  0x7f   : > { %v239_v16 = vadd.s32 (!%p386_p4), %v238_v15, %v234_v13 }
  0x81   : > { %vm241_vm1 = vcmp.lt.s32.totalorder (!%p386_p4), %v239_v16, 1920 }
  0x85   : > { %230 = sbr.rel (%p386_p4) target bundleno = 145 (0x91), region = 44 }
  0x88   : > { %v526_v7 = vpop.eup %525 }
  0x89   : > { %v225_v8 = vmul.f32 0.6931472, %v526_v7 }
  0x8b   : > { %v226_v9 = vsub.f32 0.0, %v225_v8 }
  0x8d   : > { %v242_v18 = vsel %vm241_vm1, %v226_v9, 0.0 }
  0x8e   : > { %v243_v19 = vadd.f32 %v242_v18, %v240_v17 }
  0x90   : > { %244 = vst [vmem:[%s1010_s30] sm:$0xff] %v243_v19 }
  0x91 PF: > { %p388_p2 = scmp.eq.s32.totalorder %s721_s18, 1 }
  0x93   : > { %248 = sbr.rel (%p388_p2) target bundleno = 155 (0x9b), region = 48 }
  0x97   : > { %v249_v20 = vld [vmem:[%s1010_s30] sm:$0xff] (!%p388_p2) }
  0x98   : > { %v250_v21 = vadd.f32 (!%p388_p2), %v249_v20, %v226_v9 }
  0x9a   : > { %251 = vst [vmem:[%s1010_s30] sm:$0xff] %v250_v21 }
  0x9b PF: > { %s390_s26 = sshll.u32 %s725_s19, 7  ;;  %s1133_s29 = sld [smem:[#allocation16_spill]] }
  0x9c   : > { %s266_s8 = sshll.u32 %s1010_s30, 4  ;;  %s253_s18 = scalar_lea.sflag [#allocation4], %s209_s24  ;;  %s267_s8 = int_to_ptr.vmem [resolvable:$true] %s266_s8 }
  0x9d   : > { %s587_s23 = scalar_lea.vmem %s267_s8, 128  ;;  %p1134_p0 = scmp.ne.s32.totalorder %s1120_s15, 0 }
  0x9e   : > { %p588_p11 = scmp.ne.s32.totalorder %s267_s8, %s587_s23  ;;  %s742_s25 = smov [#allocation7]  }
  0x9f   : > { %s591_s4 = sshll.u32 %s742_s25, 4  ;;  %s592_s4 = int_to_ptr.vmem [resolvable:$false] %s591_s4 }
  0xa0   : > { %p589_p12 = pnand %p588_p11, %p1134_p0  ;;  %s593_s12 = scalar_lea.vmem %s592_s4, 256 }
  0xa1   : > { %s1025_s2 = scalar_lea.hbm %s1133_s29, %s390_s26  ;;  %p594_p6 = scmp.lt.s32.totalorder %s267_s8, %s592_s4 }
  0xa2   : > { %p590_p9 = pneg %p589_p12  ;;  %p595_p7 = scmp.lt.s32.totalorder %s593_s12, %s587_s23 }
  0xa4   : > { %p596_p8 = por %p595_p7, %p594_p6 }
  0xa6   : > { %p597_p5 = pnand %p596_p8, %p590_p9 }
  0xa8   : > { %600 = shalt.err (!%p597_p5)
}
  0xa9   : > { %s601_s19 = scalar_lea.hbm %s1025_s2, 128  ;;  %s605_s28 = scalar_lea.hbm %s1133_s29, 384 }
  0xaa   : > { %p602_p10 = scmp.ne.s32.totalorder %s1025_s2, %s601_s19  ;;  %p606_p13 = scmp.lt.u32.totalorder %s1025_s2, %s1133_s29 }
  0xab   : > { %p607_p4 = scmp.lt.u32.totalorder %s605_s28, %s601_s19  ;;  %p609_p11 = scmp.lt.u32.totalorder %s601_s19, %s1025_s2 }
  0xac   : > { %p603_p3 = pnand %p602_p10, %p1134_p0 }
  0xad   : > { %p608_p2 = por %p607_p4, %p606_p13 }
  0xae   : > { %p604_p1 = pneg %p603_p3 }
  0xaf   : > { %p610_p12 = por %p609_p11, %p608_p2 }
  0xb1   : > { %p611_p9 = pnand %p610_p12, %p604_p1 }
  0xb3   : > { %614 = shalt.err (!%p611_p9)
}
  0xb4   : > { %397 = dma.vmem_to_hbm [thread:$0]  (%p1134_p0), %s267_s8, 128, %s1025_s2, %s253_s18  }
  0xb5 PF: > { %p411_p6 = scmp.ge.s32.totalorder %s737_s22, 2  ;;  %s278_s26 = sand.u32 1, %s685_s9  }
  0xb6   : > { %p1135_p7 = scmp.ne.s32.totalorder %s1121_s5, 0  ;;  %s279_s11 = scalar_lea.sflag [#allocation4], %s278_s26 }
  0xb8   : > { %p407_p8 = pnand %p411_p6, %p1135_p7 }
  0xba   : > { %680 = dma.done.wait (!%p407_p8), %s279_s11, 128  }
  0xbb   : > { %682 = vsyncadd (!%p407_p8), %s279_s11, 4294967168  ;;  %s21_s22 = sadd.s32 1, %s737_s22   ;;  %s1137_s15 = sld [smem:[#allocation11_spill]] }
  0xbc   : > { %p1052_p5 = scmp.ge.s32.totalorder %s21_s22, 8   ;;  %s1138_s11 = sld [smem:[#allocation14_spill]] }
  0xbd   : > { %s1139_s2 = sld [smem:[#allocation15_spill]]  ;;  %s1140_s5 = sld [smem:[#allocation12_spill]] }
  0xbe   : > { %s1141_s8 = sld [smem:[#allocation13_spill]]  ;;  %s1142_s9 = smov %s689_s10 }
  0xbf   : > { %s1144_s12 = smov %s701_s13  ;;  %s1145_s13 = smov %s705_s14 }
  0xc0   : > { %s1146_s14 = smov %s941_s7  ;;  %s1150_s18 = smov %s729_s20 }
  0xc1   : > { %s1143_s10 = smov %s1137_s15  ;;  %s1147_s15 = smov %s713_s16 }
  0xc2   : > { %s1148_s16 = smov %s717_s17  ;;  %s1151_s19 = smov %s733_s21 }
  0xc3   : > { %s1149_s17 = smov %s1139_s2  ;;  %s1152_s20 = smov %s1140_s5 }
  0xc4   : > { %s1153_s21 = smov %s1141_s8  ;;  %20 = sbr.rel (!%p1052_p5) target bundleno = 14 (0xe), region = 98 }
  0xcb   :  { %284 = vsyncpa [#allocation3], 1 }
  0xcc   :  { %286 = vsyncpa [#allocation3 + $0x1], 1 }
  0xcd   :  { %287 = vsyncpa [#allocation6], 1 }
  0xce   :  { %289 = vsyncpa [#allocation6 + $0x1], 1 }
  0xcf   :  { %290 = vsyncpa [#allocation4], 1 }
  0xd0   :  { %292 = vsyncpa [#allocation4 + $0x1], 1 }

</bundles_post_ra>
